<compile_context>
chip_gen: v5e
topology: v5e:2x2
jax: 0.10.0
libtpu: 0.0.40
codegen_flags: <defaults>
</compile_context>

<pallas_src>
import functools

import jax
import jax.numpy as jnp
from jax.experimental import pallas as pl
from jax.experimental.pallas import tpu as pltpu

BN_EPS = 1e-5


def _round_up(x: int, m: int) -> int:
    return (x + m - 1) // m * m


def fused_mlp_kernel(x_ref, w_ref, gamma_ref, beta_ref, o_ref, acc_ref, *,
                     true_b, pad_b, eps):
    """Fused y = x @ w -> train-mode BatchNorm -> ReLU.

    Grid (n, b, k): n "parallel", b / k "arbitrary" (k innermost).
      x_ref:     [b_tile, k_tile]       (MXU dtype)
      w_ref:     [k_tile, n_tile]       (MXU dtype; VMEM-resident across b if gk==1)
      gamma_ref: [1, n_tile]  f32
      beta_ref:  [1, n_tile]  f32
      o_ref:     [gb, b_tile, n_tile]   VMEM-resident column slab (idx (0,0,n))
      acc_ref:   [b_tile, n_tile] f32   K-reduction scratch
    """
    b = pl.program_id(1)
    k = pl.program_id(2)
    nb = pl.num_programs(1)
    nk = pl.num_programs(2)

    @pl.when(k == 0)
    def _():
        acc_ref[...] = jnp.zeros_like(acc_ref)

    acc_ref[...] += jnp.dot(x_ref[...], w_ref[...],
                            preferred_element_type=jnp.float32)

    # Finished [b_tile, n_tile] tile -> park it in the resident slab.
    @pl.when(k == nk - 1)
    def _():
        o_ref[b] = acc_ref[...].astype(o_ref.dtype)

    # Last (b, k) step for this n: the whole batch for this feature slab is in
    # VMEM.  Compute batch stats and apply BN + ReLU in place; Pallas then
    # writes the slab back to HBM exactly once (when the n block index moves).
    @pl.when((b == nb - 1) & (k == nk - 1))
    def _():
        y = o_ref[...].astype(jnp.float32)              # [gb, b_tile, n_tile]
        inv_b = jnp.float32(1.0 / true_b)
        # Padded batch rows are exactly zero (zero-padded x, no bias), so they
        # drop out of the sum; the centered sum of squares is corrected for
        # the (pad_b - true_b) zero rows -> exact biased batch variance.
        mean = jnp.sum(y, axis=(0, 1), keepdims=True) * inv_b
        centered = y - mean
        css = jnp.sum(centered * centered, axis=(0, 1), keepdims=True)
        var = (css - jnp.float32(pad_b - true_b) * (mean * mean)) * inv_b
        scale = gamma_ref[...] * jax.lax.rsqrt(var + eps)   # broadcasts to (1,1,nt)
        shift = beta_ref[...] - mean * scale
        o_ref[...] = jnp.maximum(y * scale + shift, 0.0).astype(o_ref.dtype)


def mlp_layer(x, w_t, gamma, beta, *, b_tile=256, n_tile=512, k_tile=2048,
              mxu_dtype=jnp.bfloat16, out_dtype=None,
              vmem_budget_bytes=40 * 1024 * 1024):
    """x: [B, D_in]; w_t: [D_in, D_out] (pre-transposed); gamma/beta: [1, D_out].

    The Linear bias is intentionally not an input: under train-mode BN it is
    provably canceled and would be dead work.
    """
    B, K = x.shape
    Kw, N = w_t.shape
    assert Kw == K, "w_t must be [D_in, D_out]"
    out_dtype = jnp.dtype(out_dtype or x.dtype)
    mxu_dtype = jnp.dtype(mxu_dtype or x.dtype)

    mxu_bytes = mxu_dtype.itemsize
    out_bytes = out_dtype.itemsize
    row_align = 8 if (mxu_bytes >= 4 and out_bytes >= 4) else 16

    # Clamp tiles to the (aligned) problem size.
    b_tile = min(_round_up(b_tile, row_align), _round_up(B, row_align))
    n_tile = min(_round_up(n_tile, 128), _round_up(N, 128))
    k_tile = min(_round_up(k_tile, 128), _round_up(K, 128))

    def vmem_est(bt, nt, kt):
        bp = _round_up(B, bt)
        return (2 * bt * kt * mxu_bytes          # x blocks (double-buffered)
                + 2 * kt * nt * mxu_bytes        # w blocks (double-buffered)
                + 2 * bp * nt * out_bytes        # resident output slab
                + bp * nt * 4                    # centered-slab temporary
                + bt * nt * 4                    # f32 K accumulator
                + 4 * nt * 4)                    # gamma / beta

    # Shrink tiles until the fused slab fits VMEM (n first, then k, then b).
    while vmem_est(b_tile, n_tile, k_tile) > vmem_budget_bytes and n_tile > 128:
        n_tile = _round_up(n_tile // 2, 128)
    while vmem_est(b_tile, n_tile, k_tile) > vmem_budget_bytes and k_tile > 512:
        k_tile = _round_up(k_tile // 2, 128)
    while vmem_est(b_tile, n_tile, k_tile) > vmem_budget_bytes and b_tile > row_align:
        b_tile = _round_up(b_tile // 2, row_align)

    Bp, Np, Kp = _round_up(B, b_tile), _round_up(N, n_tile), _round_up(K, k_tile)
    gb, gn, gk = Bp // b_tile, Np // n_tile, Kp // k_tile

    # TODO(synk): ragged edges are handled with padded copies here; a masked
    #             last tile would avoid the extra HBM round trip of x / out.
    x_p = x if (Bp == B and Kp == K) else jnp.pad(x, ((0, Bp - B), (0, Kp - K)))
    w_p = w_t if (Kp == K and Np == N) else jnp.pad(w_t, ((0, Kp - K), (0, Np - N)))
    x_p = x_p.astype(mxu_dtype)
    w_p = w_p.astype(mxu_dtype)
    g_p = gamma.astype(jnp.float32)
    be_p = beta.astype(jnp.float32)
    if Np != N:
        g_p = jnp.pad(g_p, ((0, 0), (0, Np - N)))
        be_p = jnp.pad(be_p, ((0, 0), (0, Np - N)))

    vmem_limit = min(max(2 * vmem_est(b_tile, n_tile, k_tile), 32 << 20), 64 << 20)

    out = pl.pallas_call(
        functools.partial(fused_mlp_kernel, true_b=B, pad_b=Bp, eps=BN_EPS),
        out_shape=jax.ShapeDtypeStruct((gb, b_tile, Np), out_dtype),
        grid=(gn, gb, gk),
        in_specs=[
            pl.BlockSpec((b_tile, k_tile), lambda n, b, k: (b, k)),
            pl.BlockSpec((k_tile, n_tile), lambda n, b, k: (k, n)),
            pl.BlockSpec((1, n_tile), lambda n, b, k: (0, n)),
            pl.BlockSpec((1, n_tile), lambda n, b, k: (0, n)),
        ],
        out_specs=pl.BlockSpec((gb, b_tile, n_tile), lambda n, b, k: (0, 0, n)),
        scratch_shapes=[pltpu.VMEM((b_tile, n_tile), jnp.float32)],
        compiler_params=pltpu.CompilerParams(
            dimension_semantics=("parallel", "arbitrary", "arbitrary"),
            vmem_limit_bytes=vmem_limit),
    )(x_p, w_p, g_p, be_p)

    out = out.reshape(Bp, Np)
    if Bp != B or Np != N:
        out = out[:B, :N]
    return out


def _reference(x, w_t, b, gamma, beta):
    y = x @ w_t + b
    mean = y.mean(axis=0, keepdims=True)
    var = ((y - mean) ** 2).mean(axis=0, keepdims=True)
    return jnp.maximum(gamma * (y - mean) / jnp.sqrt(var + BN_EPS) + beta, 0.0)


if __name__ == "__main__":
    key = jax.random.PRNGKey(0)

    # --- test 1: module-sized shapes (batch=8, input=32, output=16), f32 ----
    B, D_IN, D_OUT = 8, 32, 16
    k_x, k_w, k_b, k_g, k_be, key = jax.random.split(key, 6)
    x = jax.random.normal(k_x, (B, D_IN), dtype=jnp.float32)
    bound = 1.0 / (D_IN ** 0.5)
    w = jax.random.uniform(k_w, (D_OUT, D_IN), jnp.float32, -bound, bound)
    b = jax.random.uniform(k_b, (1, D_OUT), jnp.float32, -bound, bound)
    gamma = jax.random.uniform(k_g, (1, D_OUT), jnp.float32, 0.5, 1.5)
    beta = jax.random.normal(k_be, (1, D_OUT), jnp.float32) * 0.1

    out = mlp_layer(x, w.T, gamma, beta, mxu_dtype=None)
    jax.block_until_ready(out)
    ref = _reference(x, w.T, b, gamma, beta)
    assert out.shape == ref.shape
    assert jnp.allclose(out, ref, atol=1e-4, rtol=1e-4), "mismatch (test 1)"

    # --- test 2: multi-tile grid (gn=3, gb=3, gk=2), f32 exact path ---------
    B2, D_IN2, D_OUT2 = 48, 256, 384
    k_x, k_w, k_b, k_g, k_be, key = jax.random.split(key, 6)
    x2 = jax.random.normal(k_x, (B2, D_IN2), dtype=jnp.float32)
    bound2 = 1.0 / (D_IN2 ** 0.5)
    w2 = jax.random.uniform(k_w, (D_OUT2, D_IN2), jnp.float32, -bound2, bound2)
    b2 = jax.random.uniform(k_b, (1, D_OUT2), jnp.float32, -bound2, bound2)
    gamma2 = jax.random.uniform(k_g, (1, D_OUT2), jnp.float32, 0.5, 1.5)
    beta2 = jax.random.normal(k_be, (1, D_OUT2), jnp.float32) * 0.1

    out2 = mlp_layer(x2, w2.T, gamma2, beta2,
                     b_tile=16, n_tile=128, k_tile=128, mxu_dtype=None)
    jax.block_until_ready(out2)
    ref2 = _reference(x2, w2.T, b2, gamma2, beta2)
    assert out2.shape == ref2.shape
    assert jnp.allclose(out2, ref2, atol=1e-3, rtol=1e-3), "mismatch (test 2)"

    # --- test 3: default perf path (bf16 MXU operands, full-K, big tiles) ---
    out3 = mlp_layer(x2, w2.T, gamma2, beta2)          # defaults: bf16 + full K
    jax.block_until_ready(out3)
    assert out3.shape == ref2.shape
    assert jnp.allclose(out3, ref2, atol=3e-2, rtol=3e-2), "mismatch (test 3)"

    print("KERNEL_OK")
</pallas_src>

<mosaic_0001>
module attributes {stable_mosaic.version = 11 : i64} {
  func.func @fused_mlp_kernel(%arg0: i32, %arg1: i32, %arg2: i32, %arg3: memref<8x128xf32, #tpu.memory_space<vmem>>, %arg4: memref<128x128xf32, #tpu.memory_space<vmem>>, %arg5: memref<1x128xf32, #tpu.memory_space<vmem>>, %arg6: memref<1x128xf32, #tpu.memory_space<vmem>>, %arg7: memref<1x8x128xf32, #tpu.memory_space<vmem>>, %arg8: memref<8x128xf32, #tpu.memory_space<vmem>>) attributes {dimension_semantics = [#tpu.dimension_semantics<parallel>, #tpu.dimension_semantics<arbitrary>, #tpu.dimension_semantics<arbitrary>], iteration_bounds = array<i64: 1, 1, 1>, scalar_prefetch = 0 : i64, scratch_operands = 1 : i64, tpu.core_type = #tpu.core_type<tc>, window_params = [{transform_indices = @transform_0, window_bounds = array<i64: 8, 128>}, {transform_indices = @transform_1, window_bounds = array<i64: 128, 128>}, {transform_indices = @transform_2, window_bounds = array<i64: 1, 128>}, {transform_indices = @transform_3, window_bounds = array<i64: 1, 128>}, {transform_indices = @transform_4, window_bounds = array<i64: 1, 8, 128>}]} {
    %c0_i32 = arith.constant 0 : i32
    %0 = arith.cmpi eq, %arg2, %c0_i32 : i32
    %1 = arith.extui %0 : i1 to i32
    %c0_i32_0 = arith.constant 0 : i32
    %2 = arith.cmpi ne, %1, %c0_i32_0 : i32
    scf.if %2 {
      %cst_13 = arith.constant 0.000000e+00 : f32
      %17 = vector.broadcast %cst_13 : f32 to vector<8x128xf32>
      %c0_14 = arith.constant 0 : index
      %c0_15 = arith.constant 0 : index
      %18 = vector.load %arg8[%c0_14, %c0_15] : memref<8x128xf32, #tpu.memory_space<vmem>>, vector<8x128xf32>
      tpu.vector_store %arg8[%c0_14, %c0_15], %17 {strides = array<i32>} : memref<8x128xf32, #tpu.memory_space<vmem>>, vector<8x128xf32>,
    } else {
    }
    %c0 = arith.constant 0 : index
    %c0_1 = arith.constant 0 : index
    %3 = vector.load %arg8[%c0, %c0_1] : memref<8x128xf32, #tpu.memory_space<vmem>>, vector<8x128xf32>
    %c0_2 = arith.constant 0 : index
    %c0_3 = arith.constant 0 : index
    %4 = vector.load %arg3[%c0_2, %c0_3] : memref<8x128xf32, #tpu.memory_space<vmem>>, vector<8x128xf32>
    %c0_4 = arith.constant 0 : index
    %c0_5 = arith.constant 0 : index
    %5 = vector.load %arg4[%c0_4, %c0_5] : memref<128x128xf32, #tpu.memory_space<vmem>>, vector<128x128xf32>
    %cst = arith.constant dense<0.000000e+00> : vector<8x128xf32>
    %6 = tpu.matmul %4, %5, %cst {dimension_numbers = #tpu.dot_dimension_numbers<[1], [0], [0], [1], [0, 0, 1, 1], [], []>} : vector<8x128xf32>, vector<128x128xf32>, vector<8x128xf32> -> vector<8x128xf32>
    %7 = arith.addf %3, %6 : vector<8x128xf32>
    %c0_6 = arith.constant 0 : index
    %c0_7 = arith.constant 0 : index
    %8 = vector.load %arg8[%c0_6, %c0_7] : memref<8x128xf32, #tpu.memory_space<vmem>>, vector<8x128xf32>
    tpu.vector_store %arg8[%c0_6, %c0_7], %7 {strides = array<i32>} : memref<8x128xf32, #tpu.memory_space<vmem>>, vector<8x128xf32>,
    %c0_i32_8 = arith.constant 0 : i32
    %9 = arith.cmpi eq, %arg2, %c0_i32_8 : i32
    %10 = arith.extui %9 : i1 to i32
    %c0_i32_9 = arith.constant 0 : i32
    %11 = arith.cmpi ne, %10, %c0_i32_9 : i32
    scf.if %11 {
      %c0_13 = arith.constant 0 : index
      %c0_14 = arith.constant 0 : index
      %17 = vector.load %arg8[%c0_13, %c0_14] : memref<8x128xf32, #tpu.memory_space<vmem>>, vector<8x128xf32>
      %18 = arith.index_cast %arg1 : i32 to index
      %c0_15 = arith.constant 0 : index
      %c0_16 = arith.constant 0 : index
      %19 = vector.load %arg7[%18, %c0_15, %c0_16] : memref<1x8x128xf32, #tpu.memory_space<vmem>>, vector<1x8x128xf32>
      %20 = vector.shape_cast %19 : vector<1x8x128xf32> to vector<8x128xf32>
      %21 = vector.shape_cast %17 : vector<8x128xf32> to vector<1x8x128xf32>
      tpu.vector_store %arg7[%18, %c0_15, %c0_16], %21 {strides = array<i32>} : memref<1x8x128xf32, #tpu.memory_space<vmem>>, vector<1x8x128xf32>,
    } else {
    }
    %c0_i32_10 = arith.constant 0 : i32
    %12 = arith.cmpi eq, %arg1, %c0_i32_10 : i32
    %c0_i32_11 = arith.constant 0 : i32
    %13 = arith.cmpi eq, %arg2, %c0_i32_11 : i32
    %14 = arith.andi %12, %13 : i1
    %15 = arith.extui %14 : i1 to i32
    %c0_i32_12 = arith.constant 0 : i32
    %16 = arith.cmpi ne, %15, %c0_i32_12 : i32
    scf.if %16 {
      %c0_13 = arith.constant 0 : index
      %c0_14 = arith.constant 0 : index
      %c0_15 = arith.constant 0 : index
      %17 = vector.load %arg7[%c0_13, %c0_14, %c0_15] : memref<1x8x128xf32, #tpu.memory_space<vmem>>, vector<1x8x128xf32>
      %cst_16 = arith.constant dense<0.000000e+00> : vector<128xf32>
      %18 = vector.multi_reduction <add>, %17, %cst_16 [0, 1] : vector<1x8x128xf32> to vector<128xf32>
      %19 = vector.shape_cast %18 : vector<128xf32> to vector<1x1x128xf32>
      %cst_17 = arith.constant 1.250000e-01 : f32
      %20 = vector.broadcast %cst_17 : f32 to vector<1x1x128xf32>
      %21 = arith.mulf %19, %20 : vector<1x1x128xf32>
      %22 = vector.broadcast %21 : vector<1x1x128xf32> to vector<1x8x128xf32>
      %23 = arith.subf %17, %22 : vector<1x8x128xf32>
      %24 = arith.mulf %23, %23 : vector<1x8x128xf32>
      %cst_18 = arith.constant dense<0.000000e+00> : vector<128xf32>
      %25 = vector.multi_reduction <add>, %24, %cst_18 [0, 1] : vector<1x8x128xf32> to vector<128xf32>
      %26 = vector.shape_cast %25 : vector<128xf32> to vector<1x1x128xf32>
      %27 = arith.mulf %21, %21 : vector<1x1x128xf32>
      %cst_19 = arith.constant 0.000000e+00 : f32
      %28 = vector.broadcast %cst_19 : f32 to vector<1x1x128xf32>
      %29 = arith.mulf %28, %27 : vector<1x1x128xf32>
      %30 = arith.subf %26, %29 : vector<1x1x128xf32>
      %cst_20 = arith.constant 1.250000e-01 : f32
      %31 = vector.broadcast %cst_20 : f32 to vector<1x1x128xf32>
      %32 = arith.mulf %30, %31 : vector<1x1x128xf32>
      %c0_21 = arith.constant 0 : index
      %c0_22 = arith.constant 0 : index
      %33 = vector.load %arg5[%c0_21, %c0_22] : memref<1x128xf32, #tpu.memory_space<vmem>>, vector<1x128xf32>
      %cst_23 = arith.constant 9.99999974E-6 : f32
      %34 = vector.broadcast %cst_23 : f32 to vector<1x1x128xf32>
      %35 = arith.addf %32, %34 : vector<1x1x128xf32>
      %36 = math.rsqrt %35 : vector<1x1x128xf32>
      %37 = vector.shape_cast %33 : vector<1x128xf32> to vector<1x1x128xf32>
      %38 = arith.mulf %37, %36 : vector<1x1x128xf32>
      %c0_24 = arith.constant 0 : index
      %c0_25 = arith.constant 0 : index
      %39 = vector.load %arg6[%c0_24, %c0_25] : memref<1x128xf32, #tpu.memory_space<vmem>>, vector<1x128xf32>
      %40 = arith.mulf %21, %38 : vector<1x1x128xf32>
      %41 = vector.shape_cast %39 : vector<1x128xf32> to vector<1x1x128xf32>
      %42 = arith.subf %41, %40 : vector<1x1x128xf32>
      %43 = vector.broadcast %38 : vector<1x1x128xf32> to vector<1x8x128xf32>
      %44 = arith.mulf %17, %43 : vector<1x8x128xf32>
      %45 = vector.broadcast %42 : vector<1x1x128xf32> to vector<1x8x128xf32>
      %46 = arith.addf %44, %45 : vector<1x8x128xf32>
      %cst_26 = arith.constant 0.000000e+00 : f32
      %47 = vector.broadcast %cst_26 : f32 to vector<1x8x128xf32>
      %48 = arith.maximumf %46, %47 : vector<1x8x128xf32>
      %c0_27 = arith.constant 0 : index
      %c0_28 = arith.constant 0 : index
      %c0_29 = arith.constant 0 : index
      %49 = vector.load %arg7[%c0_27, %c0_28, %c0_29] : memref<1x8x128xf32, #tpu.memory_space<vmem>>, vector<1x8x128xf32>
      tpu.vector_store %arg7[%c0_27, %c0_28, %c0_29], %48 {strides = array<i32>} : memref<1x8x128xf32, #tpu.memory_space<vmem>>, vector<1x8x128xf32>,
    } else {
    }
    return
  }
  func.func @transform_0(%arg0: i32, %arg1: i32, %arg2: i32) -> (i32, i32) {
    %c0_i32 = arith.constant 0 : i32
    return %arg1, %arg2 : i32, i32
  }
  func.func @transform_1(%arg0: i32, %arg1: i32, %arg2: i32) -> (i32, i32) {
    %c0_i32 = arith.constant 0 : i32
    return %arg2, %arg0 : i32, i32
  }
  func.func @transform_2(%arg0: i32, %arg1: i32, %arg2: i32) -> (i32, i32) {
    %c0_i32 = arith.constant 0 : i32
    %c0_i32_0 = arith.constant 0 : i32
    return %c0_i32, %arg0 : i32, i32
  }
  func.func @transform_3(%arg0: i32, %arg1: i32, %arg2: i32) -> (i32, i32) {
    %c0_i32 = arith.constant 0 : i32
    %c0_i32_0 = arith.constant 0 : i32
    return %c0_i32, %arg0 : i32, i32
  }
  func.func @transform_4(%arg0: i32, %arg1: i32, %arg2: i32) -> (i32, i32, i32) {
    %c0_i32 = arith.constant 0 : i32
    %c0_i32_0 = arith.constant 0 : i32
    %c0_i32_1 = arith.constant 0 : i32
    return %c0_i32, %c0_i32_0, %arg0 : i32, i32, i32
  }
}

</mosaic_0001>

<bundles_post_ra>
// kernel: tpu_custom_call.1
= control target key start
LH: loop header
LB: loop body
LE: loop exit
PB: predicated region body
PF: predicated region fallthrough
CT: control target
= control target key end

     0   :  { %9 = vsyncpa [#allocation4], 0  ;;  %s299_s0 = inlined_call_operand.hbm [shape: f32[8,128], index: 0, kind: input, shape index: {}]   ;;  %s300_s1 = inlined_call_operand.hbm [shape: f32[128,128], index: 1, kind: input, shape index: {}]   ;;  %s301_s2 = inlined_call_operand.vmem [shape: f32[1,128], index: 2, kind: input, shape index: {}]   ;;  %s302_s3 = inlined_call_operand.vmem [shape: f32[1,128], index: 3, kind: input, shape index: {}]   ;;  %s303_s4 = inlined_call_operand.hbm [shape: f32[1,8,128], index: 4, kind: output, shape index: {}]  }
   0x1   :  { %10 = vsyncpa [#allocation7], 0 }
   0x2   :  { %11 = vsyncpa [#allocation5], 0  ;;  %s17_s17 = sshll.u32 %s299_s0, 4  ;;  %s254_s18 = smov [#allocation3]   ;;  %s18_s17 = int_to_ptr.hbm [resolvable:$true] %s17_s17 }
   0x3   :  { %s19_s19 = sshll.u32 %s254_s18, 4  ;;  %s27_s22 = sshll.u32 %s300_s1, 4  ;;  %s20_s19 = int_to_ptr.vmem [resolvable:$true] %s19_s19  ;;  %s28_s22 = int_to_ptr.hbm [resolvable:$true] %s27_s22 }
   0x4   :  { %22 = dma.hbm_to_vmem [thread:$0]  %s18_s17, 128, %s20_s19, [#allocation4]  }
   0x5   :  { %s255_s23 = smov [#allocation6]   ;;  %s256_s25 = smov 128  }
   0x6   :  { %s29_s24 = sshll.u32 %s255_s23, 4  ;;  %s257_s26 = smov 8   ;;  %s30_s24 = int_to_ptr.vmem [resolvable:$true] %s29_s24 }
   0x7   :  { %35 = dma.hbm_to_vmem [thread:$0]  %s28_s22, 2048, %s30_s24, [#allocation7], %s256_s25, %s256_s25, %s257_s26  }
   0x8   :  { %248 = dma.done.wait [#allocation4], 128  }
   0x9   :  { %249 = vsyncadd [#allocation4], 4294967168 }
   0xa   :  { %250 = dma.done.wait [#allocation7], 2048  }
   0xb   :  { %251 = vsyncadd [#allocation7], 4294965248  ;;  %v70_v0 = vld [vmem:[#allocation6 + $0x78] sm:$0xff]  ;;  %v69_v1 = vld [vmem:[#allocation6 + $0x70] sm:$0xff]  ;;  %s258_s29 = smov [#allocation8]  }
   0xc   :  { %71 = vmatpush.msra.mxu0 %v70_v0  ;;  %v68_v2 = vld [vmem:[#allocation6 + $0x68] sm:$0xff]  ;;  %v67_v3 = vld [vmem:[#allocation6 + $0x60] sm:$0xff]  ;;  %v66_v4 = vld [vmem:[#allocation6 + $0x58] sm:$0xff]  ;;  %s156_s30 = sshll.u32 %s258_s29, 4  ;;  %s157_s30 = int_to_ptr.vmem [resolvable:$true] %s156_s30 }
   0xd   :  { %v65_v5 = vld [vmem:[#allocation6 + $0x50] sm:$0xff]  ;;  %v64_v6 = vld [vmem:[#allocation6 + $0x48] sm:$0xff]  ;;  %v63_v7 = vld [vmem:[#allocation6 + $0x40] sm:$0xff] }
   0xe   :  { %72 = vmatpush.msra.mxu0 %v69_v1  ;;  %v62_v8 = vld [vmem:[#allocation6 + $0x38] sm:$0xff]  ;;  %v61_v9 = vld [vmem:[#allocation6 + $0x30] sm:$0xff]  ;;  %v60_v10 = vld [vmem:[#allocation6 + $0x28] sm:$0xff] }
   0xf   :  { %v59_v11 = vld [vmem:[#allocation6 + $0x20] sm:$0xff]  ;;  %v58_v12 = vld [vmem:[#allocation6 + $0x18] sm:$0xff]  ;;  %v57_v13 = vld [vmem:[#allocation6 + $0x10] sm:$0xff] }
  0x10   :  { %73 = vmatpush.msra.mxu0 %v68_v2  ;;  %v56_v14 = vld [vmem:[#allocation6 + $0x8] sm:$0xff]  ;;  %v55_v15 = vld [vmem:[#allocation6] sm:$0xff]  ;;  %v54_v16 = vld [vmem:[#allocation3] sm:$0xff] }
  0x11   :  { %v125_v43 = vld [vmem:[%s301_s2] sm:$0x1]  ;;  %s158_s2 = sshll.u32 %s303_s4, 4  ;;  %s159_s2 = int_to_ptr.hbm [resolvable:$true] %s158_s2 }
  0x12   :  { %74 = vmatpush.msra.mxu0 %v67_v3  ;;  %v138_v47 = vld [vmem:[%s302_s3] sm:$0x1] }
  0x14   :  { %75 = vmatpush.msra.mxu0 %v66_v4 }
  0x16   :  { %76 = vmatpush.msra.mxu0 %v65_v5 }
  0x18   :  { %77 = vmatpush.msra.mxu0 %v64_v6 }
  0x1a   :  { %78 = vmatpush.msra.mxu0 %v63_v7 }
  0x1c   :  { %79 = vmatpush.msra.mxu0 %v62_v8 }
  0x1e   :  { %80 = vmatpush.msra.mxu0 %v61_v9 }
  0x20   :  { %81 = vmatpush.msra.mxu0 %v60_v10 }
  0x22   :  { %82 = vmatpush.msra.mxu0 %v59_v11 }
  0x24   :  { %83 = vmatpush.msra.mxu0 %v58_v12 }
  0x26   :  { %84 = vmatpush.msra.mxu0 %v57_v13 }
  0x28   :  { %85 = vmatpush.msra.mxu0 %v56_v14 }
  0x2a   :  { %86 = vmatpush.msra.mxu0 %v55_v15 }
  0x2b   :  { %87 = vmatmul.f32.vlgmr.msra.gmra.mxu0 %v54_v16 }
  0xa8   :  { %v88_v17 = vpop.f32.mrf.mxu0 }
  0xa9   :  { %v106_v18 = vrot.slane %v88_v17, 4 }
  0xab   :  { %v107_v19 = vadd.f32 %v106_v18, %v88_v17 }
  0xad   :  { %v108_v20 = vrot.slane %v107_v19, 2 }
  0xaf   :  { %v109_v21 = vadd.f32 %v108_v20, %v107_v19 }
  0xb1   :  { %v110_v22 = vrot.slane %v109_v21, 1 }
  0xb3   :  { %v111_v23 = vadd.f32 %v110_v22, %v109_v21 }
  0xb5   :  { %v112_v24 = vmul.f32 0.125, %v111_v23 }
  0xb7   :  { %v113_v25 = vsub.f32 %v88_v17, %v112_v24  ;;  %v121_v31 = vmul.f32 %v112_v24, %v112_v24 }
  0xb9   :  { %v114_v26 = vmul.f32 %v113_v25, %v113_v25  ;;  %v122_v34 = vmul.f32 0.0, %v121_v31 }
  0xbb   :  { %v115_v27 = vrot.slane %v114_v26, 4 }
  0xbd   :  { %v116_v28 = vadd.f32 %v115_v27, %v114_v26 }
  0xbf   :  { %v117_v29 = vrot.slane %v116_v28, 2 }
  0xc1   :  { %v118_v30 = vadd.f32 %v117_v29, %v116_v28 }
  0xc3   :  { %v119_v32 = vrot.slane %v118_v30, 1 }
  0xc5   :  { %v120_v33 = vadd.f32 %v119_v32, %v118_v30 }
  0xc7   :  { %v123_v35 = vsub.f32 %v120_v33, %v122_v34 }
  0xc9   :  { %v124_v36 = vmul.f32 0.125, %v123_v35 }
  0xcb   :  { %v126_v37 = vadd.f32 1e-05, %v124_v36 }
  0xcd   :  { %174 = vrsqrt.f32 %v126_v37  ;;  %vm133_vm1 = vweird.f32 %v126_v37 }
  0xd3   :  { %v175_v38 = vpop.eup %174 }
  0xd4   :  { %v128_v39 = vmul.f32 %v175_v38, %v126_v37  ;;  %vm134_vm0 = vweird.f32 %v175_v38 }
  0xd5   :  { %vm135_vm2 = vmor %vm133_vm1, %vm134_vm0 }
  0xd6   :  { %v129_v40 = vmul.f32 %v175_v38, %v128_v39 }
  0xd8   :  { %v130_v41 = vmul.f32 0.5, %v129_v40 }
  0xda   :  { %v131_v42 = vsub.f32 1.5, %v130_v41 }
  0xdc   :  { %v132_v44 = vmul.f32 %v175_v38, %v131_v42 }
  0xde   :  { %v136_v45 = vsel %vm135_vm2, %v175_v38, %v132_v44 }
  0xdf   :  { %v137_v46 = vmul.f32 %v136_v45, %v125_v43 }
  0xe1   :  { %v139_v48 = vmul.f32 %v137_v46, %v112_v24  ;;  %v142_v49 = vperm.slane %v137_v46, 0 }
  0xe3   :  { %v140_v50 = vsub.f32 %v138_v47, %v139_v48  ;;  %v144_v51 = vmul.f32 %v142_v49, %v88_v17 }
  0xe5   :  { %v146_v52 = vperm.slane %v140_v50, 0 }
  0xe7   :  { %v148_v53 = vadd.f32 %v146_v52, %v144_v51 }
  0xe9   :  { %v149_v54 = vmax.f32 %v148_v53, 0.0 }
  0xeb   :  { %150 = vst [vmem:[#allocation8] sm:$0xff] %v149_v54 }
  0xec   :  { %161 = dma.vmem_to_hbm [thread:$0]  %s157_s30, 128, %s159_s2, [#allocation5]  }
  0xed   :  { %252 = dma.done.wait [#allocation5], 128  }
  0xee   :  { %253 = vsyncadd [#allocation5], 4294967168 }
  0xef   :  { %166 = vsyncpa [#allocation4], 1 }
  0xf0   :  { %167 = vsyncpa [#allocation7], 1 }
  0xf1   :  { %168 = vsyncpa [#allocation5], 1 }

</bundles_post_ra>
